<compile_context>
chip_gen: v6e
topology: v6e:2x2x1
jax: 0.10.0
libtpu: 0.0.40
codegen_flags: <defaults>
</compile_context>

<pallas_src>
import jax
import jax.numpy as jnp
from jax.experimental import pallas as pl
from jax.experimental.pallas import tpu as pltpu


def _cls_head_kernel(x_ref, w_ref, b_ref, o_ref, acc_ref):
    # x_ref: [TM, TK], w_ref: [TK, 2], b_ref: [1, 2] (f32),
    # o_ref: [TM, 2],  acc_ref: [TM, 2] f32 scratch (resident across the K axis).
    k = pl.program_id(1)

    @pl.when(k == 0)
    def _():
        acc_ref[...] = jnp.zeros_like(acc_ref)

    acc_ref[...] += jnp.dot(
        x_ref[...], w_ref[...], preferred_element_type=jnp.float32
    )

    @pl.when(k == pl.num_programs(1) - 1)
    def _():
        o_ref[...] = (acc_ref[...] + b_ref[...]).astype(o_ref.dtype)


def _choose_tiles(B, D, x_itemsize):
    """Pick (TM, TK) satisfying the (8,128) rule and a cross-gen VMEM budget."""
    # K tile: keep full D unless it is large AND cleanly splittable into
    # multiples of 128 (partial K edge blocks must not feed the reduction).
    TK_MAX = 2048
    if D <= TK_MAX or D % 128 != 0:
        TK = D
    else:
        TK = TK_MAX
        while D % TK != 0:
            TK -= 128
    # Batch tile: target 512 rows, shrink by powers of two (floor 32 so any
    # dtype's sublane packing is satisfied) until one X buffer is <= ~16 MiB,
    # i.e. the double-buffered X stream stays well inside v7x's 64 MiB VMEM.
    budget_bytes = 16 * 1024 * 1024
    TM = 512
    while TM > 32 and TM * TK * x_itemsize > budget_bytes:
        TM //= 2
    if B <= TM:
        TM = B  # full-dim exemption from the multiple-of-8 rule
    return TM, TK


def cls_head_forward(x, w, b):
    """Forward pass of Cls_head.

    x: [B, ...]     (flattened to [B, proj_dim]; dtype kept as-is, e.g. bf16/f32)
    w: [proj_dim, 2]  (already transposed from PyTorch's [out, in] layout)
    b: [2]
    returns: [B, 2] float32 logits
    """
    B = x.shape[0]
    x2d = jnp.reshape(x, (B, -1))  # nn.Flatten(); NO dtype cast (keeps HBM traffic minimal)
    D = x2d.shape[1]
    assert w.shape == (D, 2), f"weight shape mismatch: {w.shape} vs ({D}, 2)"

    # Match matmul operand dtype to X (bf16 X -> native bf16 MXU); W is tiny.
    w_k = w.astype(x2d.dtype)
    b2d = jnp.reshape(b, (1, 2)).astype(jnp.float32)

    TM, TK = _choose_tiles(B, D, x2d.dtype.itemsize)
    grid = (pl.cdiv(B, TM), pl.cdiv(D, TK))  # reduction (K) axis last

    out = pl.pallas_call(
        _cls_head_kernel,
        out_shape=jax.ShapeDtypeStruct((B, 2), jnp.float32),
        grid_spec=pltpu.PrefetchScalarGridSpec(
            num_scalar_prefetch=0,
            grid=grid,
            in_specs=[
                pl.BlockSpec((TM, TK), lambda i, k: (i, k)),   # X: streamed tiles
                pl.BlockSpec((TK, 2), lambda i, k: (k, 0)),    # W: K-tiled, batch-resident
                pl.BlockSpec((1, 2), lambda i, k: (0, 0)),     # bias: fully resident
            ],
            out_specs=pl.BlockSpec((TM, 2), lambda i, k: (i, 0)),
            scratch_shapes=[pltpu.VMEM((TM, 2), jnp.float32)],
        ),
        compiler_params=pltpu.CompilerParams(
            # Batch tiles are independent -> "parallel" (v7x 2-TC sharding);
            # K accumulates into VMEM scratch -> "arbitrary".
            dimension_semantics=("parallel", "arbitrary"),
            vmem_limit_bytes=48 * 1024 * 1024,
        ),
    )(x2d, w_k, b2d)
    return out


if __name__ == "__main__":
    key = jax.random.PRNGKey(0)
    kx, kw, kb, kx2, kw2, kb2 = jax.random.split(key, 6)

    # --- 1) Tiny configuration consistent with the module (args.proj_dim=32, batch=4).
    proj_dim, batch = 32, 4
    x = jax.random.normal(kx, (batch, proj_dim), dtype=jnp.float32)
    bound = 1.0 / jnp.sqrt(jnp.float32(proj_dim))
    w = jax.random.uniform(kw, (proj_dim, 2), jnp.float32, -bound, bound)
    b = jax.random.uniform(kb, (2,), jnp.float32, -bound, bound)

    y = jax.block_until_ready(cls_head_forward(x, w, b))
    y_ref = jnp.reshape(x, (batch, -1)) @ w + b
    assert y.shape == (batch, 2)
    assert jnp.allclose(y, y_ref, atol=1e-5, rtol=1e-5)

    # --- 2) Larger bf16 configuration exercising batch tiling, K tiling and pipelining.
    B2, D2 = 1024, 4096
    x2 = jax.random.normal(kx2, (B2, D2), dtype=jnp.float32).astype(jnp.bfloat16)
    bound2 = 1.0 / jnp.sqrt(jnp.float32(D2))
    w2 = jax.random.uniform(kw2, (D2, 2), jnp.float32, -bound2, bound2)
    b2 = jax.random.uniform(kb2, (2,), jnp.float32, -bound2, bound2)

    y2 = jax.block_until_ready(cls_head_forward(x2, w2, b2))
    # Reference uses the same bf16-quantized operands the kernel sees.
    y2_ref = (
        x2.astype(jnp.float32) @ w2.astype(jnp.bfloat16).astype(jnp.float32)
    ) + b2
    assert y2.shape == (B2, 2)
    assert jnp.allclose(y2, y2_ref, atol=2e-2, rtol=2e-2)

    print("KERNEL_OK")
</pallas_src>

<mosaic_0001>
module attributes {stable_mosaic.version = 11 : i64} {
  func.func @_cls_head_kernel(%arg0: i32, %arg1: i32, %arg2: memref<4x32xf32, #tpu.memory_space<vmem>>, %arg3: memref<32x2xf32, #tpu.memory_space<vmem>>, %arg4: memref<1x2xf32, #tpu.memory_space<vmem>>, %arg5: memref<4x2xf32, #tpu.memory_space<vmem>>, %arg6: memref<4x2xf32, #tpu.memory_space<vmem>>) attributes {dimension_semantics = [#tpu.dimension_semantics<parallel>, #tpu.dimension_semantics<arbitrary>], iteration_bounds = array<i64: 1, 1>, scalar_prefetch = 0 : i64, scratch_operands = 1 : i64, tpu.core_type = #tpu.core_type<tc>, window_params = [{transform_indices = @transform_0, window_bounds = array<i64: 4, 32>}, {transform_indices = @transform_1, window_bounds = array<i64: 32, 2>}, {pipeline_mode = #tpu.pipeline_mode<synchronous>, transform_indices = @transform_2, window_bounds = array<i64: 1, 2>}, {transform_indices = @transform_3, window_bounds = array<i64: 4, 2>}]} {
    %c0_i32 = arith.constant 0 : i32
    %0 = arith.cmpi eq, %arg1, %c0_i32 : i32
    %1 = arith.extui %0 : i1 to i32
    %c0_i32_0 = arith.constant 0 : i32
    %2 = arith.cmpi ne, %1, %c0_i32_0 : i32
    scf.if %2 {
      %cst_10 = arith.constant 0.000000e+00 : f32
      %12 = vector.broadcast %cst_10 : f32 to vector<4x2xf32>
      %c0_11 = arith.constant 0 : index
      %c0_12 = arith.constant 0 : index
      %13 = vector.load %arg6[%c0_11, %c0_12] : memref<4x2xf32, #tpu.memory_space<vmem>>, vector<4x2xf32>
      tpu.vector_store %arg6[%c0_11, %c0_12], %12 {strides = array<i32>} : memref<4x2xf32, #tpu.memory_space<vmem>>, vector<4x2xf32>,
    } else {
    }
    %c0 = arith.constant 0 : index
    %c0_1 = arith.constant 0 : index
    %3 = vector.load %arg6[%c0, %c0_1] : memref<4x2xf32, #tpu.memory_space<vmem>>, vector<4x2xf32>
    %c0_2 = arith.constant 0 : index
    %c0_3 = arith.constant 0 : index
    %4 = vector.load %arg2[%c0_2, %c0_3] : memref<4x32xf32, #tpu.memory_space<vmem>>, vector<4x32xf32>
    %c0_4 = arith.constant 0 : index
    %c0_5 = arith.constant 0 : index
    %5 = vector.load %arg3[%c0_4, %c0_5] : memref<32x2xf32, #tpu.memory_space<vmem>>, vector<32x2xf32>
    %cst = arith.constant dense<0.000000e+00> : vector<4x2xf32>
    %6 = tpu.matmul %4, %5, %cst {dimension_numbers = #tpu.dot_dimension_numbers<[1], [0], [0], [1], [0, 0, 1, 1], [], []>} : vector<4x32xf32>, vector<32x2xf32>, vector<4x2xf32> -> vector<4x2xf32>
    %7 = arith.addf %3, %6 : vector<4x2xf32>
    %c0_6 = arith.constant 0 : index
    %c0_7 = arith.constant 0 : index
    %8 = vector.load %arg6[%c0_6, %c0_7] : memref<4x2xf32, #tpu.memory_space<vmem>>, vector<4x2xf32>
    tpu.vector_store %arg6[%c0_6, %c0_7], %7 {strides = array<i32>} : memref<4x2xf32, #tpu.memory_space<vmem>>, vector<4x2xf32>,
    %c0_i32_8 = arith.constant 0 : i32
    %9 = arith.cmpi eq, %arg1, %c0_i32_8 : i32
    %10 = arith.extui %9 : i1 to i32
    %c0_i32_9 = arith.constant 0 : i32
    %11 = arith.cmpi ne, %10, %c0_i32_9 : i32
    scf.if %11 {
      %c0_10 = arith.constant 0 : index
      %c0_11 = arith.constant 0 : index
      %12 = vector.load %arg6[%c0_10, %c0_11] : memref<4x2xf32, #tpu.memory_space<vmem>>, vector<4x2xf32>
      %c0_12 = arith.constant 0 : index
      %c0_13 = arith.constant 0 : index
      %13 = vector.load %arg4[%c0_12, %c0_13] : memref<1x2xf32, #tpu.memory_space<vmem>>, vector<1x2xf32>
      %14 = vector.broadcast %13 : vector<1x2xf32> to vector<4x2xf32>
      %15 = arith.addf %12, %14 : vector<4x2xf32>
      %c0_14 = arith.constant 0 : index
      %c0_15 = arith.constant 0 : index
      %16 = vector.load %arg5[%c0_14, %c0_15] : memref<4x2xf32, #tpu.memory_space<vmem>>, vector<4x2xf32>
      tpu.vector_store %arg5[%c0_14, %c0_15], %15 {strides = array<i32>} : memref<4x2xf32, #tpu.memory_space<vmem>>, vector<4x2xf32>,
    } else {
    }
    return
  }
  func.func @transform_0(%arg0: i32, %arg1: i32) -> (i32, i32) {
    %c0_i32 = arith.constant 0 : i32
    return %arg0, %arg1 : i32, i32
  }
  func.func @transform_1(%arg0: i32, %arg1: i32) -> (i32, i32) {
    %c0_i32 = arith.constant 0 : i32
    %c0_i32_0 = arith.constant 0 : i32
    return %arg1, %c0_i32 : i32, i32
  }
  func.func @transform_2(%arg0: i32, %arg1: i32) -> (i32, i32) {
    %c0_i32 = arith.constant 0 : i32
    %c0_i32_0 = arith.constant 0 : i32
    %c0_i32_1 = arith.constant 0 : i32
    return %c0_i32, %c0_i32_0 : i32, i32
  }
  func.func @transform_3(%arg0: i32, %arg1: i32) -> (i32, i32) {
    %c0_i32 = arith.constant 0 : i32
    %c0_i32_0 = arith.constant 0 : i32
    return %arg0, %c0_i32 : i32, i32
  }
}

</mosaic_0001>

<bundles_post_ra>
// kernel: tpu_custom_call.1
= control target key start
LH: loop header
LB: loop body
LE: loop exit
PB: predicated region body
PF: predicated region fallthrough
CT: control target
= control target key end

     0   :  { %vm18_vm0 = vcmask 11264   ;;  %v140_v0 = vmov 0.0   ;;  %vm141_vm1 = vmmov 0   ;;  %vm26_vm2 = vcmask 261120   ;;  %s186_s1 = inlined_call_operand.vmem [shape: f32[32,2], index: 1, kind: input, shape index: {}]   ;;  %s187_s0 = inlined_call_operand.vmem [shape: f32[4,32], index: 0, kind: input, shape index: {}]   ;;  %s188_s2 = inlined_call_operand.vmem [shape: f32[1,2], index: 2, kind: input, shape index: {}]   ;;  %s189_s3 = inlined_call_operand.vmem [shape: f32[4,2], index: 3, kind: output, shape index: {}]  }
   0x1   :  { %127 = vmatprep.subr.mxu0 %v140_v0  ;;  %v25_v1 = vld [vmem:[%s186_s1 + $0x18] sm:$0xff]  ;;  %v24_v2 = vld [vmem:[%s186_s1 + $0x10] sm:$0xff]  ;;  %135 = vmatprep.mubr.msk.f32.mxu0 %vm141_vm1, %v140_v0  ;;  %19 = vst.msk [vmem:[#allocation2] sm:$0xf] %vm18_vm0, %v140_v0  ;;  %v23_v3 = vld [vmem:[%s186_s1 + $0x8] sm:$0xff] }
   0x2   :  { %128 = vmatpush3.msra.mxu0 %v25_v1  ;;  %v22_v4 = vld [vmem:[%s186_s1] sm:$0xff] }
   0x3   :  { %129 = vmatprep.subr.mxu0 %v140_v0  ;;  %v21_v5 = vld [vmem:[%s187_s0] sm:$0xf] }
   0x4   :  { %130 = vmatpush3.msra.mxu0 %v24_v2  ;;  %v121_v10 = vld [vmem:[%s188_s2] ss:$0 sm:$0xff] }
   0x5   :  { %131 = vmatprep.subr.mxu0 %v140_v0 }
   0x6   :  { %132 = vmatpush3.msra.mxu0 %v23_v3 }
   0x7   :  { %133 = vmatprep.subr.mxu0 %v140_v0 }
   0x8   :  { %134 = vmatpush3.msra.mxu0 %v22_v4  ;;  %v20_v6 = vld [vmem:[#allocation2] sm:$0xf] }
   0x9   :  { %136 = vmatmul.mubr.msk.f32.vlgmr.msra.gmra.mxu0 %vm26_vm2, %v21_v5 }
  0xc9   :  { %v96_v7 = vpop.f32.mrf.mxu0 }
  0xca   :  { %v100_v8 = vadd.f32 %v96_v7, %v20_v6 }
  0xcb   :  { %v137_v9 = vpop.f32.mrf.mxu0 }
  0xcc   :  { %102 = vst.msk [vmem:[#allocation2] sm:$0xf] %vm18_vm0, %v100_v8 }
  0xd3   :  { %v106_v11 = vld [vmem:[#allocation2] sm:$0xf] }
  0xd4   :  { %v114_v12 = vadd.f32 %v121_v10, %v106_v11 }
  0xd6   :  { %115 = vst.msk [vmem:[%s189_s3] sm:$0xf] %vm18_vm0, %v114_v12 }

</bundles_post_ra>
